<compile_context>
chip_gen: v5e
topology: v5e:2x2
jax: 0.10.0
libtpu: 0.0.40
codegen_flags: <defaults>
</compile_context>

<pallas_src>
import functools

import jax
import jax.numpy as jnp
from jax import lax
from jax.experimental import pallas as pl
from jax.experimental.pallas import tpu as pltpu


def _poly_loss_kernel(x_ref, t_ref, out_ref, *, epsilon, n_rows,
                      targets_lane_major):
    """One (tile_n, C) tile of logits -> one per-tile partial loss sum.

    The partial sum is written to out_ref[0, 0] of an (8, 128) slab (rest
    zeros), so the output block is always (8,128)-tile aligned.  Rows past the
    true batch size contribute exactly 0 (select mask), so the grid axis is
    fully parallel.
    """
    i = pl.program_id(0)

    x = x_ref[...].astype(jnp.float32)            # (TN, C) logits, f32 in-reg
    tn = x.shape[0]

    if targets_lane_major:
        t = jnp.transpose(t_ref[...])             # (1, TN) -> (TN, 1) int32
    else:
        t = t_ref[...]                            # (TN, 1) int32

    # Numerically stable log-softmax pieces; z is reused for the gather.
    m = jnp.max(x, axis=1, keepdims=True)                       # (TN, 1)
    z = x - m                                                   # (TN, C)
    e = jnp.exp(z)                                              # (TN, C)
    log_s = jnp.log(jnp.sum(e, axis=1, keepdims=True))          # (TN, 1)

    # Target logit (shifted) via one-hot compare+select on z (VPU + XLU).
    col = lax.broadcasted_iota(jnp.int32, z.shape, 1)           # (TN, C)
    z_t = jnp.sum(jnp.where(col == t, z, 0.0), axis=1, keepdims=True)

    ce = log_s - z_t                  # -log softmax(x)[target], per row
    pt = jnp.exp(-ce)                 # softmax prob of target (reuses log_s)
    loss = ce + epsilon * (1.0 - pt)  # (TN, 1)

    # Mask rows past the true batch size (ragged last / only tile), then
    # reduce to a single per-tile partial sum.
    row = lax.broadcasted_iota(jnp.int32, (tn, 1), 0) + i * tn
    masked = jnp.where(row < n_rows, loss, 0.0)                 # (TN, 1)
    s = jnp.sum(masked, axis=0, keepdims=True)                  # (1, 1)

    r8 = lax.broadcasted_iota(jnp.int32, (8, 128), 0)
    c128 = lax.broadcasted_iota(jnp.int32, (8, 128), 1)
    out_ref[...] = jnp.where((r8 == 0) & (c128 == 0), s, 0.0)   # (8, 128)


def _choose_tile(n, c, in_itemsize, vmem_budget_bytes=20 * 1024 * 1024):
    """Pick (tile_n, targets_lane_major) from a VMEM byte budget.

    Per-row VMEM estimate uses the LANE-PADDED class count and counts:
      2x double-buffered input rows + ~5 live f32/int32 (row, c_pad) temps
      (cast/z, e, iota, mask, select) + padded lane-major target rows.
    ~20 MiB tile budget + 40 MiB vmem_limit keeps headroom on v7x (64 MiB/TC)
    while per-step input blocks reach multiple MiB on v5e/v6e/v7x.
    """
    c_pad = ((c + 127) // 128) * 128
    per_row = c_pad * (2 * in_itemsize + 5 * 4) + 2 * 8 * 4 + 64
    tn = max(8, int(vmem_budget_bytes // per_row))

    n_pad8 = ((n + 7) // 8) * 8
    if tn >= n_pad8:
        return n_pad8, True                    # whole batch in one tile
    if tn >= 128:
        return (tn // 128) * 128, True         # lane-major targets need %128
    return max(8, (tn // 8) * 8), False        # huge-C fallback (sublane-major)


def poly_loss(outputs, targets, epsilon=-1.0, tile_n=None):
    """outputs: (N, C) float logits (f32 or bf16); targets: (N,) int classes."""
    n, c = outputs.shape
    if tile_n is None:
        tile_n, targets_lane_major = _choose_tile(n, c, outputs.dtype.itemsize)
    else:
        tile_n = int(tile_n)
        targets_lane_major = (tile_n % 128 == 0) or (tile_n >= n)

    num_tiles = int(pl.cdiv(n, tile_n))
    padded_n = num_tiles * tile_n

    t = targets.astype(jnp.int32)
    if padded_n != n:
        t = jnp.pad(t, (0, padded_n - n))      # pad value 0; masked in-kernel

    if targets_lane_major:
        t_arr = t.reshape(1, padded_n)
        t_spec = pl.BlockSpec((1, tile_n), lambda i: (0, i))
    else:
        t_arr = t.reshape(padded_n, 1)
        t_spec = pl.BlockSpec((tile_n, 1), lambda i: (i, 0))

    kernel = functools.partial(
        _poly_loss_kernel,
        epsilon=float(epsilon),
        n_rows=n,
        targets_lane_major=targets_lane_major,
    )

    per_tile = pl.pallas_call(
        kernel,
        out_shape=jax.ShapeDtypeStruct((num_tiles * 8, 128), jnp.float32),
        grid_spec=pltpu.PrefetchScalarGridSpec(
            num_scalar_prefetch=0,
            grid=(num_tiles,),
            in_specs=[
                pl.BlockSpec((tile_n, c), lambda i: (i, 0)),
                t_spec,
            ],
            out_specs=pl.BlockSpec((8, 128), lambda i: (i, 0)),
        ),
        compiler_params=pltpu.CompilerParams(
            dimension_semantics=("parallel",),
            vmem_limit_bytes=40 * 1024 * 1024,
        ),
    )(outputs, t_arr)

    # Tiny final reduction: num_tiles partial sums (in 4 KiB slabs) -> mean.
    return jnp.sum(per_tile) / n


def _poly_loss_ref(outputs, targets, epsilon=-1.0):
    logp = jax.nn.log_softmax(outputs.astype(jnp.float32), axis=1)
    ce = -jnp.take_along_axis(logp, targets[:, None], axis=1)[:, 0]
    pt = jnp.take_along_axis(jnp.exp(logp), targets[:, None], axis=1)[:, 0]
    return jnp.mean(ce + epsilon * (1.0 - pt))


if __name__ == "__main__":
    key = jax.random.PRNGKey(0)
    k1, k2, k3, k4, k5, k6 = jax.random.split(key, 6)

    # Small synthetic classification batch consistent with the module forward.
    N, C = 16, 32
    outputs = jax.random.normal(k1, (N, C), dtype=jnp.float32)
    targets = jax.random.randint(k2, (N,), 0, C, dtype=jnp.int32)

    loss = jax.block_until_ready(poly_loss(outputs, targets, epsilon=-1.0))
    ref = _poly_loss_ref(outputs, targets, epsilon=-1.0)
    assert jnp.allclose(loss, ref, atol=1e-5, rtol=1e-5), (loss, ref)

    # Ragged batch / non-128 class count exercises the in-kernel row mask and
    # the wrapper-side target padding.
    N2, C2 = 12, 10
    outputs2 = jax.random.normal(k3, (N2, C2), dtype=jnp.float32)
    targets2 = jax.random.randint(k4, (N2,), 0, C2, dtype=jnp.int32)
    loss2 = jax.block_until_ready(poly_loss(outputs2, targets2, epsilon=-1.0))
    ref2 = _poly_loss_ref(outputs2, targets2, epsilon=-1.0)
    assert jnp.allclose(loss2, ref2, atol=1e-5, rtol=1e-5), (loss2, ref2)

    # Multi-tile path (forced small tile, %128 so lane-major targets engage).
    N3, C3 = 300, 40
    outputs3 = jax.random.normal(k5, (N3, C3), dtype=jnp.float32)
    targets3 = jax.random.randint(k6, (N3,), 0, C3, dtype=jnp.int32)
    loss3 = jax.block_until_ready(
        poly_loss(outputs3, targets3, epsilon=-1.0, tile_n=128))
    ref3 = _poly_loss_ref(outputs3, targets3, epsilon=-1.0)
    assert jnp.allclose(loss3, ref3, atol=1e-5, rtol=1e-5), (loss3, ref3)

    print("KERNEL_OK")
</pallas_src>

<mosaic_0001>
module attributes {stable_mosaic.version = 11 : i64} {
  func.func @_poly_loss_kernel(%arg0: i32, %arg1: memref<16x32xf32, #tpu.memory_space<vmem>>, %arg2: memref<1x16xi32, #tpu.memory_space<vmem>>, %arg3: memref<8x128xf32, #tpu.memory_space<vmem>>) attributes {dimension_semantics = [#tpu.dimension_semantics<parallel>], iteration_bounds = array<i64: 1>, scalar_prefetch = 0 : i64, scratch_operands = 0 : i64, tpu.core_type = #tpu.core_type<tc>, window_params = [{transform_indices = @transform_0, window_bounds = array<i64: 16, 32>}, {transform_indices = @transform_1, window_bounds = array<i64: 1, 16>}, {transform_indices = @transform_2, window_bounds = array<i64: 8, 128>}]} {
    %c0 = arith.constant 0 : index
    %c0_0 = arith.constant 0 : index
    %0 = vector.load %arg1[%c0, %c0_0] : memref<16x32xf32, #tpu.memory_space<vmem>>, vector<16x32xf32>
    %c0_1 = arith.constant 0 : index
    %c0_2 = arith.constant 0 : index
    %1 = vector.load %arg2[%c0_1, %c0_2] : memref<1x16xi32, #tpu.memory_space<vmem>>, vector<1x16xi32>
    %2 = tpu.transpose %1, [1, 0] : vector<1x16xi32> -> vector<16x1xi32>
    %cst = arith.constant dense<0xFF800000> : vector<16xf32>
    %3 = vector.multi_reduction <maximumf>, %0, %cst [1] : vector<16x32xf32> to vector<16xf32>
    %4 = vector.shape_cast %3 : vector<16xf32> to vector<16x1xf32>
    %5 = vector.broadcast %4 : vector<16x1xf32> to vector<16x32xf32>
    %6 = arith.subf %0, %5 : vector<16x32xf32>
    %7 = math.exp %6 : vector<16x32xf32>
    %cst_3 = arith.constant dense<0.000000e+00> : vector<16xf32>
    %8 = vector.multi_reduction <add>, %7, %cst_3 [1] : vector<16x32xf32> to vector<16xf32>
    %9 = vector.shape_cast %8 : vector<16xf32> to vector<16x1xf32>
    %10 = math.log %9 : vector<16x1xf32>
    %11 = tpu.iota {dimensions = array<i32: 1>} : vector<16x32xi32>
    %12 = vector.broadcast %2 : vector<16x1xi32> to vector<16x32xi32>
    %13 = arith.cmpi eq, %11, %12 : vector<16x32xi32>
    %cst_4 = arith.constant 0.000000e+00 : f32
    %14 = vector.broadcast %cst_4 : f32 to vector<16x32xf32>
    %15 = arith.select %13, %6, %14 : vector<16x32xi1>, vector<16x32xf32>
    %cst_5 = arith.constant dense<0.000000e+00> : vector<16xf32>
    %16 = vector.multi_reduction <add>, %15, %cst_5 [1] : vector<16x32xf32> to vector<16xf32>
    %17 = vector.shape_cast %16 : vector<16xf32> to vector<16x1xf32>
    %18 = arith.subf %10, %17 : vector<16x1xf32>
    %cst_6 = arith.constant 0.000000e+00 : f32
    %19 = vector.broadcast %cst_6 : f32 to vector<16x1xf32>
    %20 = arith.subf %19, %18 : vector<16x1xf32>
    %21 = math.exp %20 : vector<16x1xf32>
    %cst_7 = arith.constant 1.000000e+00 : f32
    %22 = vector.broadcast %cst_7 : f32 to vector<16x1xf32>
    %23 = arith.subf %22, %21 : vector<16x1xf32>
    %cst_8 = arith.constant -1.000000e+00 : f32
    %24 = vector.broadcast %cst_8 : f32 to vector<16x1xf32>
    %25 = arith.mulf %24, %23 : vector<16x1xf32>
    %26 = arith.addf %18, %25 : vector<16x1xf32>
    %27 = tpu.iota {dimensions = array<i32: 0>} : vector<16x1xi32>
    %c16_i32 = arith.constant 16 : i32
    %28 = arith.muli %arg0, %c16_i32 : i32
    %29 = vector.broadcast %28 : i32 to vector<16x1xi32>
    %30 = arith.addi %27, %29 : vector<16x1xi32>
    %c16_i32_9 = arith.constant 16 : i32
    %31 = vector.broadcast %c16_i32_9 : i32 to vector<16x1xi32>
    %32 = arith.cmpi slt, %30, %31 : vector<16x1xi32>
    %cst_10 = arith.constant 0.000000e+00 : f32
    %33 = vector.broadcast %cst_10 : f32 to vector<16x1xf32>
    %34 = arith.select %32, %26, %33 : vector<16x1xi1>, vector<16x1xf32>
    %cst_11 = arith.constant dense<0.000000e+00> : vector<1xf32>
    %35 = vector.multi_reduction <add>, %34, %cst_11 [0] : vector<16x1xf32> to vector<1xf32>
    %36 = vector.shape_cast %35 : vector<1xf32> to vector<1x1xf32>
    %37 = tpu.iota {dimensions = array<i32: 0>} : vector<8x128xi32>
    %38 = tpu.iota {dimensions = array<i32: 1>} : vector<8x128xi32>
    %c0_i32 = arith.constant 0 : i32
    %39 = vector.broadcast %c0_i32 : i32 to vector<8x128xi32>
    %40 = arith.cmpi eq, %37, %39 : vector<8x128xi32>
    %c0_i32_12 = arith.constant 0 : i32
    %41 = vector.broadcast %c0_i32_12 : i32 to vector<8x128xi32>
    %42 = arith.cmpi eq, %38, %41 : vector<8x128xi32>
    %43 = arith.andi %40, %42 : vector<8x128xi1>
    %cst_13 = arith.constant 0.000000e+00 : f32
    %44 = vector.shape_cast %36 : vector<1x1xf32> to vector<1x1xf32>
    %45 = vector.broadcast %44 : vector<1x1xf32> to vector<8x128xf32>
    %46 = vector.broadcast %cst_13 : f32 to vector<8x128xf32>
    %47 = arith.select %43, %45, %46 : vector<8x128xi1>, vector<8x128xf32>
    %c0_14 = arith.constant 0 : index
    %c0_15 = arith.constant 0 : index
    %48 = vector.load %arg3[%c0_14, %c0_15] : memref<8x128xf32, #tpu.memory_space<vmem>>, vector<8x128xf32>
    tpu.vector_store %arg3[%c0_14, %c0_15], %47 {strides = array<i32>} : memref<8x128xf32, #tpu.memory_space<vmem>>, vector<8x128xf32>,
    return
  }
  func.func @transform_0(%arg0: i32) -> (i32, i32) {
    %c0_i32 = arith.constant 0 : i32
    %c0_i32_0 = arith.constant 0 : i32
    return %arg0, %c0_i32 : i32, i32
  }
  func.func @transform_1(%arg0: i32) -> (i32, i32) {
    %c0_i32 = arith.constant 0 : i32
    %c0_i32_0 = arith.constant 0 : i32
    return %c0_i32, %arg0 : i32, i32
  }
  func.func @transform_2(%arg0: i32) -> (i32, i32) {
    %c0_i32 = arith.constant 0 : i32
    %c0_i32_0 = arith.constant 0 : i32
    return %arg0, %c0_i32 : i32, i32
  }
}

</mosaic_0001>

<bundles_post_ra>
// kernel: tpu_custom_call.1
= control target key start
LH: loop header
LB: loop body
LE: loop exit
PB: predicated region body
PF: predicated region fallthrough
CT: control target
= control target key end

     0   :  { %7 = vsyncpa [#allocation3], 0  ;;  %s308_s0 = inlined_call_operand.hbm [shape: f32[16,32], index: 0, kind: input, shape index: {}]   ;;  %s309_s1 = inlined_call_operand.hbm [shape: s32[1,16], index: 1, kind: input, shape index: {}]   ;;  %s310_s2 = inlined_call_operand.hbm [shape: f32[8,128], index: 2, kind: output, shape index: {}]  }
   0x1   :  { %8 = vsyncpa [#allocation6], 0 }
   0x2   :  { %9 = vsyncpa [#allocation4], 0  ;;  %s14_s11 = sshll.u32 %s308_s0, 4  ;;  %s272_s12 = smov [#allocation2]   ;;  %s15_s11 = int_to_ptr.hbm [resolvable:$true] %s14_s11 }
   0x3   :  { %s16_s13 = sshll.u32 %s272_s12, 4  ;;  %s28_s16 = sshll.u32 %s309_s1, 4  ;;  %s17_s13 = int_to_ptr.vmem [resolvable:$true] %s16_s13  ;;  %s29_s16 = int_to_ptr.hbm [resolvable:$true] %s28_s16 }
   0x4   :  { %s273_s17 = smov 128   ;;  %s274_s18 = smov 8  }
   0x5   :  { %22 = dma.hbm_to_vmem [thread:$0]  %s15_s11, 256, %s17_s13, [#allocation3], %s273_s17, %s273_s17, %s274_s18  }
   0x6   :  { %s275_s19 = smov [#allocation5]  }
   0x7   :  { %s30_s20 = sshll.u32 %s275_s19, 4  ;;  %s31_s20 = int_to_ptr.vmem [resolvable:$true] %s30_s20 }
   0x8   :  { %33 = dma.hbm_to_vmem [thread:$0]  %s29_s16, 16, %s31_s20, [#allocation6]  }
   0x9   :  { %266 = dma.done.wait [#allocation3], 256  }
   0xa   :  { %267 = vsyncadd [#allocation3], 4294967040 }
   0xb   :  { %268 = dma.done.wait [#allocation6], 16  }
   0xc   :  { %269 = vsyncadd [#allocation6], 4294967280  ;;  %vm77_vm0 = vcmask 261120   ;;  %v44_v0 = vld [vmem:[#allocation5] sm:$0x1]  ;;  %v43_v1 = vld [vmem:[#allocation2 + $0x8] sm:$0xff]  ;;  %v100_v18 = vlaneseq }
   0xd   :  { %45 = vxpose.xlu0.b32.start.end [1/1] (short) (narrow) %v44_v0, 16  ;;  %v81_v2 = vsel %vm77_vm0, %v43_v1, -inf  ;;  %v276_v3 = vmov 0   ;;  %v42_v4 = vld [vmem:[#allocation2] sm:$0xff]  ;;  %s277_s0 = smov [#allocation7]   ;;  %s162_s23 = sshll.u32 %s310_s2, 4  ;;  %s163_s23 = int_to_ptr.hbm [resolvable:$true] %s162_s23 }
   0xe   :  { %82 = vmax.xlane.f32.xlu1 %v81_v2  ;;  %180 = vset.pattern.permute.xlu2 %v276_v3  ;;  %v78_v5 = vsel %vm77_vm0, %v42_v4, -inf  ;;  %v101_v19 = vand.u32 127, %v100_v18  ;;  %v133_v51 = vshrl.u32 %v100_v18, 7  ;;  %s160_s1 = sshll.u32 %s277_s0, 4  ;;  %s161_s1 = int_to_ptr.vmem [resolvable:$true] %s160_s1 }
   0xf   :  { %179 = vset.pattern.permute.xlu1 %v276_v3 }
  0x10   :  { %vm150_vm3 = vcmp.eq.s32.totalorder %v133_v51, 0  ;;  %vm151_vm4 = vcmp.eq.s32.totalorder %v101_v19, 0 }
  0x11   :  { %vm152_vm5 = vmand %vm150_vm3, %vm151_vm4 }
  0x74   :  { %181 = vset.pattern.permute.xlu0 %v276_v3 }
  0x81   :  { %v83_v8 = vpop.xlane.xlu1 %82 }
  0x82   :  { %v85_v9 = vsub.f32 %v43_v1, %v83_v8 }
  0x84   :  { %v88_v10 = vmul.f32 1.442695, %v85_v9 }
  0x86   :  { %79 = vmax.xlane.f32.xlu0 %v78_v5  ;;  %182 = vpow2.f32 %v88_v10 }
  0x8c   :  { %v183_v11 = vpop.eup %182 }
  0x8d   :  { %v93_v12 = vsel %vm77_vm0, %v183_v11, 0.0 }
  0xb1   :  { %v61_v6 = vpop.trf.xlu0 }
  0xb2   :  { %103 = vperm.xlu1 %179, %v61_v6  }
  0xb9   :  { %v62_v7 = vpop.trf.xlu0 }
  0xba   :  { %106 = vperm.xlu2 %180, %v62_v7  }
  0xdc   :  { %94 = vadd.xlane.f32.xlu1 %v93_v12 }
  0xf9   :  { %v80_v13 = vpop.xlane.xlu0 %79 }
  0xfa   :  { %v84_v14 = vsub.f32 %v42_v4, %v80_v13 }
  0xfc   :  { %v86_v15 = vmul.f32 1.442695, %v84_v14 }
  0xfe   :  { %184 = vpow2.f32 %v86_v15 }
 0x104   :  { %v185_v16 = vpop.eup %184 }
 0x105   :  { %v90_v17 = vsel %vm77_vm0, %v185_v16, 0.0 }
 0x106   :  { %91 = vadd.xlane.f32.xlu2 %v90_v17 }
 0x114   :  { %v107_v21 = vpop.permute.xlu2 %106 }
 0x115   :  { %vm109_vm2 = vcmp.eq.s32.totalorder %v101_v19, %v107_v21 }
 0x116   :  { %v111_v24 = vsel %vm109_vm2, %v85_v9, 0.0 }
 0x117   :  { %v115_v25 = vsel %vm77_vm0, %v111_v24, 0.0 }
 0x124   :  { %v104_v20 = vpop.permute.xlu1 %103 }
 0x125   :  { %vm108_vm1 = vcmp.eq.s32.totalorder %v101_v19, %v104_v20 }
 0x126   :  { %v110_v22 = vsel %vm108_vm1, %v84_v14, 0.0 }
 0x127   :  { %v112_v23 = vsel %vm77_vm0, %v110_v22, 0.0 }
 0x128   :  { %113 = vadd.xlane.f32.xlu2 %v112_v23 }
 0x130   :  { %116 = vadd.xlane.f32.xlu2 %v115_v25 }
 0x14f   :  { %v95_v28 = vpop.xlane.xlu1 %94 }
 0x179   :  { %v92_v26 = vpop.xlane.xlu2 %91 }
 0x17a   :  { %186 = vlog2.f32 %v92_v26 }
 0x17b   :  { %188 = vlog2.f32 %v95_v28 }
 0x180   :  { %v187_v27 = vpop.eup %186 }
 0x181   :  { %v97_v29 = vmul.f32 0.6931472, %v187_v27  ;;  %v189_v33 = vpop.eup %188 }
 0x182   :  { %v99_v35 = vmul.f32 0.6931472, %v189_v33 }
 0x19b   :  { %v114_v30 = vpop.xlane.xlu2 %113 }
 0x19c   :  { %v118_v31 = vsub.f32 %v97_v29, %v114_v30 }
 0x19e   :  { %v120_v32 = vsub.f32 0.0, %v118_v31 }
 0x1a0   :  { %v122_v34 = vmul.f32 1.442695, %v120_v32 }
 0x1a2   :  { %190 = vpow2.f32 %v122_v34 }
 0x1a3   :  { %v117_v36 = vpop.xlane.xlu2 %116 }
 0x1a4   :  { %v119_v37 = vsub.f32 %v99_v35, %v117_v36 }
 0x1a6   :  { %v121_v38 = vsub.f32 0.0, %v119_v37 }
 0x1a8   :  { %v124_v39 = vmul.f32 1.442695, %v121_v38  ;;  %v191_v40 = vpop.eup %190 }
 0x1a9   :  { %v126_v41 = vsub.f32 1.0, %v191_v40 }
 0x1aa   :  { %192 = vpow2.f32 %v124_v39 }
 0x1ab   :  { %v128_v43 = vmul.f32 -1.0, %v126_v41 }
 0x1ad   :  { %v130_v46 = vadd.f32 %v128_v43, %v118_v31 }
 0x1b0   :  { %v193_v42 = vpop.eup %192 }
 0x1b1   :  { %v127_v44 = vsub.f32 1.0, %v193_v42 }
 0x1b3   :  { %v129_v45 = vmul.f32 -1.0, %v127_v44 }
 0x1b5   :  { %v131_v47 = vadd.f32 %v129_v45, %v119_v37 }
 0x1b7   :  { %v143_v48 = vadd.f32 %v131_v47, %v130_v46 }
 0x1b9   :  { %v144_v49 = vrot.slane %v143_v48, 4 }
 0x1bb   :  { %v145_v50 = vadd.f32 %v144_v49, %v143_v48 }
 0x1bd   :  { %v146_v52 = vrot.slane %v145_v50, 2 }
 0x1bf   :  { %v147_v53 = vadd.f32 %v146_v52, %v145_v50 }
 0x1c1   :  { %v148_v54 = vrot.slane %v147_v53, 1 }
 0x1c3   :  { %v149_v55 = vadd.f32 %v148_v54, %v147_v53 }
 0x1c5   :  { %v153_v56 = vsel %vm152_vm5, %v149_v55, 0.0 }
 0x1c6   :  { %154 = vst [vmem:[#allocation7] sm:$0xff] %v153_v56 }
 0x1c7   :  { %165 = dma.vmem_to_hbm [thread:$0]  %s161_s1, 128, %s163_s23, [#allocation4]  }
 0x1c8   :  { %270 = dma.done.wait [#allocation4], 128  }
 0x1c9   :  { %271 = vsyncadd [#allocation4], 4294967168 }
 0x1ca   :  { %170 = vsyncpa [#allocation3], 1 }
 0x1cb   :  { %171 = vsyncpa [#allocation6], 1 }
 0x1cc   :  { %172 = vsyncpa [#allocation4], 1 }

</bundles_post_ra>
